<compile_context>
chip_gen: v7x
topology: tpu7x:2x2x1
jax: 0.10.0
libtpu: 0.0.40
codegen_flags: <defaults>
</compile_context>

<pallas_src>
import functools

import jax
import jax.numpy as jnp
from jax.experimental import pallas as pl
from jax.experimental.pallas import tpu as pltpu

LANE = 128           # lane width (last dim alignment)
SUBLANE = 16         # bf16 sublane packing (second-to-last dim alignment)
_VMEM_BUDGET = 32 * 1024 * 1024        # planning budget (portable v5e/v6e/v7x)
_VMEM_LIMIT_BYTES = 48 * 1024 * 1024   # raise v5e's 16 MiB default, < v7x 64 MiB


def _round_up(v, m):
    return (v + m - 1) // m * m


# ----------------------------- kernels -------------------------------------


def _fb_resident_kernel(x_ref, w_ref, shift_ref, o_ref):
    """Whole (scaled) weight resident in VMEM: single MXU dot + shift add."""
    acc = jnp.dot(x_ref[...], w_ref[...], preferred_element_type=jnp.float32)
    o_ref[...] = (acc + shift_ref[...]).astype(o_ref.dtype)


def _fb_ktiled_kernel(x_ref, w_ref, shift_ref, o_ref, acc_ref):
    """Canonical M/N/K tiled matmul with f32 VMEM accumulator (K innermost)."""
    @pl.when(pl.program_id(2) == 0)
    def _init():
        acc_ref[...] = jnp.zeros_like(acc_ref)

    acc_ref[...] += jnp.dot(x_ref[...], w_ref[...],
                            preferred_element_type=jnp.float32)

    @pl.when(pl.program_id(2) == pl.num_programs(2) - 1)
    def _finalize():
        o_ref[...] = (acc_ref[...] + shift_ref[...]).astype(o_ref.dtype)


# --------------------------- static planning --------------------------------


def _plan_nk(D, N, out_itemsize):
    """Batch-independent tiling plan (residency decision, tn/tk, pad sizes)."""
    D_pad = _round_up(D, LANE)
    N_pad = _round_up(N, LANE)

    # Resident-W path: count the weight double-buffered (conservative) plus the
    # smallest possible x/out tiles; if that fits, keep W in VMEM for the whole
    # kernel and drop the K/N grid axes entirely.
    w_cost = 2 * (D_pad * N_pad * 2)                                   # bf16, 2 bufs
    min_rows_cost = SUBLANE * (2 * D_pad * 2 + 2 * N_pad * out_itemsize)
    shift_cost = 2 * N_pad * 4
    if w_cost + min_rows_cost + shift_cost <= _VMEM_BUDGET:
        return dict(resident=True, tn=N_pad, tk=D_pad, D_pad=D_pad, N_pad=N_pad)

    # K-tiled fallback for large D*N: big tk/tn to amortize accumulator RMW and
    # per-grid-step overhead (>=256-wide tiles feed the 256^2 MXUs of v6e/v7x).
    tk = min(2048, D_pad)
    tn = min(512, N_pad)
    return dict(resident=False, tn=tn, tk=tk,
                D_pad=_round_up(D, tk), N_pad=_round_up(N, tn))


def _plan_m(B, plan, out_itemsize):
    """Pick tm / B_pad for a given batch size (VMEM fit + megacore split)."""
    D_pad, N_pad = plan["D_pad"], plan["N_pad"]
    tk, tn = plan["tk"], plan["tn"]
    if plan["resident"]:
        fixed = 2 * D_pad * N_pad * 2 + 2 * N_pad * 4
        per_row = 2 * D_pad * 2 + 2 * N_pad * out_itemsize
    else:
        fixed = 2 * tk * tn * 2 + 2 * tn * 4
        per_row = 2 * tk * 2 + tn * 4 + 2 * tn * out_itemsize

    tm_budget = max(SUBLANE,
                    (_VMEM_BUDGET - fixed) // per_row // SUBLANE * SUBLANE)
    # ~half the batch per M block so grid has >=2 parallel M blocks when the
    # batch allows it (keeps v7x's second TensorCore busy, bounds padding).
    split2 = _round_up(-(-B // 2), SUBLANE)
    tm = max(SUBLANE, min(512, tm_budget, _round_up(B, SUBLANE), split2))
    B_pad = _round_up(B, tm)
    return tm, B_pad


# ----------------------------- forward --------------------------------------


@functools.partial(
    jax.jit,
    static_argnames=("n_out", "tm", "tn", "tk", "B_pad", "resident", "out_dtype"))
def _feature_block_forward(x, w_p, shift_p, *, n_out, tm, tn, tk, B_pad,
                           resident, out_dtype):
    B, D = x.shape
    D_pad, N_pad = w_p.shape

    x_b = x if x.dtype == jnp.bfloat16 else x.astype(jnp.bfloat16)
    if (B_pad, D_pad) != (B, D):   # zero padding is exact for the matmul
        x_b = jnp.pad(x_b, ((0, B_pad - B), (0, D_pad - D)))

    out_itemsize = jnp.dtype(out_dtype).itemsize
    cost = pl.CostEstimate(
        flops=2 * B_pad * D_pad * N_pad,
        transcendentals=0,
        bytes_accessed=(B_pad * D_pad * 2 + D_pad * N_pad * 2
                        + N_pad * 4 + B_pad * N_pad * out_itemsize))

    if resident:
        grid = (B_pad // tm,)
        out_p = pl.pallas_call(
            _fb_resident_kernel,
            out_shape=jax.ShapeDtypeStruct((B_pad, N_pad), out_dtype),
            grid=grid,
            in_specs=[
                pl.BlockSpec((tm, D_pad), lambda i: (i, 0)),       # x tile
                pl.BlockSpec((D_pad, N_pad), lambda i: (0, 0)),    # resident W
                pl.BlockSpec((1, N_pad), lambda i: (0, 0)),        # folded shift
            ],
            out_specs=pl.BlockSpec((tm, N_pad), lambda i: (i, 0)),
            compiler_params=pltpu.CompilerParams(
                dimension_semantics=("parallel",),
                vmem_limit_bytes=_VMEM_LIMIT_BYTES),
            cost_estimate=cost,
        )(x_b, w_p, shift_p)
    else:
        grid = (B_pad // tm, N_pad // tn, D_pad // tk)
        out_p = pl.pallas_call(
            _fb_ktiled_kernel,
            out_shape=jax.ShapeDtypeStruct((B_pad, N_pad), out_dtype),
            grid=grid,
            in_specs=[
                pl.BlockSpec((tm, tk), lambda i, j, k: (i, k)),    # x tile
                pl.BlockSpec((tk, tn), lambda i, j, k: (k, j)),    # W tile
                pl.BlockSpec((1, tn), lambda i, j, k: (0, j)),     # folded shift
            ],
            out_specs=pl.BlockSpec((tm, tn), lambda i, j, k: (i, j)),
            scratch_shapes=[pltpu.VMEM((tm, tn), jnp.float32)],
            compiler_params=pltpu.CompilerParams(
                dimension_semantics=("parallel", "parallel", "arbitrary"),
                vmem_limit_bytes=_VMEM_LIMIT_BYTES),
            cost_estimate=cost,
        )(x_b, w_p, shift_p)

    if (B_pad, N_pad) != (B, n_out):   # only slice when padding actually happened
        out_p = out_p[:B, :n_out]
    return out_p


class FeatureBlockPallas:
    """Inference FeatureBlock: y = BN_eval(Linear(x)).

    Constant prep (BN fold into the weight columns and the shift vector, bf16
    cast, lane padding) happens exactly once here, not per forward call.
    """

    def __init__(self, weight, bias, gamma, beta, running_mean, running_var,
                 eps=1e-5, out_dtype=jnp.float32):
        # weight: (low_dim, input_dim) as in nn.Linear.
        N, D = weight.shape
        inv_std = jax.lax.rsqrt(running_var.astype(jnp.float32) + eps)
        scale = gamma.astype(jnp.float32) * inv_std                         # (N,)
        shift = (beta.astype(jnp.float32)
                 + (bias.astype(jnp.float32)
                    - running_mean.astype(jnp.float32)) * scale)            # (N,)
        w_scaled = weight.astype(jnp.float32).T * scale[None, :]            # (D, N)

        self._n_out = N
        self._out_dtype = out_dtype
        self._plan = _plan_nk(D, N, jnp.dtype(out_dtype).itemsize)
        D_pad, N_pad = self._plan["D_pad"], self._plan["N_pad"]

        # One-time cast + lane-dense padding of the constants.
        self._w_p = jnp.pad(w_scaled.astype(jnp.bfloat16),
                            ((0, D_pad - D), (0, N_pad - N)))
        self._shift_p = jnp.pad(shift.reshape(1, N), ((0, 0), (0, N_pad - N)))

    def __call__(self, x):
        tm, B_pad = _plan_m(x.shape[0], self._plan,
                            jnp.dtype(self._out_dtype).itemsize)
        return _feature_block_forward(
            x, self._w_p, self._shift_p,
            n_out=self._n_out, tm=tm,
            tn=self._plan["tn"], tk=self._plan["tk"],
            B_pad=B_pad, resident=self._plan["resident"],
            out_dtype=self._out_dtype)


# ------------------------------ test ----------------------------------------


def init_featureblock_params(key, input_dim, low_dim):
    k_w, k_g, k_rm, k_rv = jax.random.split(key, 4)
    # weights_init_kaiming: Linear weight = kaiming_normal(fan_out) -> std = sqrt(2/low_dim); bias = 0.
    std = (2.0 / low_dim) ** 0.5
    w = std * jax.random.normal(k_w, (low_dim, input_dim), dtype=jnp.float32)
    b = jnp.zeros((low_dim,), dtype=jnp.float32)
    # BatchNorm1d: weight ~ N(1.0, 0.01), bias = 0.
    gamma = 1.0 + 0.01 * jax.random.normal(k_g, (low_dim,), dtype=jnp.float32)
    beta = jnp.zeros((low_dim,), dtype=jnp.float32)
    # Eval-mode running stats (non-trivial values to exercise the affine path).
    running_mean = 0.1 * jax.random.normal(k_rm, (low_dim,), dtype=jnp.float32)
    running_var = 1.0 + 0.2 * jax.random.uniform(k_rv, (low_dim,), dtype=jnp.float32)
    return w, b, gamma, beta, running_mean, running_var


if __name__ == "__main__":
    key = jax.random.PRNGKey(0)
    k_x, k_p = jax.random.split(key)

    batch, input_dim, low_dim = 8, 32, 64
    x = jax.random.normal(k_x, (batch, input_dim), dtype=jnp.float32)
    weight, bias, gamma, beta, r_mean, r_var = init_featureblock_params(
        k_p, input_dim, low_dim)

    block = FeatureBlockPallas(weight, bias, gamma, beta, r_mean, r_var, eps=1e-5)
    out = block(x)
    out = jax.block_until_ready(out)

    # Plain-JAX reference (eval-mode BN). Kernel uses bf16 operands -> loose tol.
    lin = x @ weight.T + bias
    ref = (lin - r_mean) * jax.lax.rsqrt(r_var + 1e-5) * gamma + beta
    assert out.shape == (batch, low_dim)
    assert jnp.allclose(out, ref, atol=5e-2, rtol=5e-2), \
        f"max abs err {float(jnp.max(jnp.abs(out - ref)))}"

    print("KERNEL_OK")
</pallas_src>

<mosaic_0001>
module attributes {stable_mosaic.version = 11 : i64} {
  func.func @_fb_resident_kernel(%arg0: i32, %arg1: memref<16x128xbf16, #tpu.memory_space<vmem>>, %arg2: memref<128x128xbf16, #tpu.memory_space<vmem>>, %arg3: memref<1x128xf32, #tpu.memory_space<vmem>>, %arg4: memref<16x128xf32, #tpu.memory_space<vmem>>) attributes {dimension_semantics = [#tpu.dimension_semantics<parallel>], iteration_bounds = array<i64: 1>, scalar_prefetch = 0 : i64, scratch_operands = 0 : i64, tpu.core_type = #tpu.core_type<tc>, window_params = [{transform_indices = @transform_0, window_bounds = array<i64: 16, 128>}, {pipeline_mode = #tpu.pipeline_mode<synchronous>, transform_indices = @transform_1, window_bounds = array<i64: 128, 128>}, {pipeline_mode = #tpu.pipeline_mode<synchronous>, transform_indices = @transform_2, window_bounds = array<i64: 1, 128>}, {transform_indices = @transform_3, window_bounds = array<i64: 16, 128>}]} {
    %c0 = arith.constant 0 : index
    %c0_0 = arith.constant 0 : index
    %0 = vector.load %arg1[%c0, %c0_0] : memref<16x128xbf16, #tpu.memory_space<vmem>>, vector<16x128xbf16>
    %c0_1 = arith.constant 0 : index
    %c0_2 = arith.constant 0 : index
    %1 = vector.load %arg2[%c0_1, %c0_2] : memref<128x128xbf16, #tpu.memory_space<vmem>>, vector<128x128xbf16>
    %cst = arith.constant dense<0.000000e+00> : vector<16x128xf32>
    %2 = tpu.matmul %0, %1, %cst {dimension_numbers = #tpu.dot_dimension_numbers<[1], [0], [0], [1], [0, 0, 1, 1], [], []>} : vector<16x128xbf16>, vector<128x128xbf16>, vector<16x128xf32> -> vector<16x128xf32>
    %c0_3 = arith.constant 0 : index
    %c0_4 = arith.constant 0 : index
    %3 = vector.load %arg3[%c0_3, %c0_4] : memref<1x128xf32, #tpu.memory_space<vmem>>, vector<1x128xf32>
    %4 = vector.broadcast %3 : vector<1x128xf32> to vector<16x128xf32>
    %5 = arith.addf %2, %4 : vector<16x128xf32>
    %c0_5 = arith.constant 0 : index
    %c0_6 = arith.constant 0 : index
    %6 = vector.load %arg4[%c0_5, %c0_6] : memref<16x128xf32, #tpu.memory_space<vmem>>, vector<16x128xf32>
    tpu.vector_store %arg4[%c0_5, %c0_6], %5 {strides = array<i32>} : memref<16x128xf32, #tpu.memory_space<vmem>>, vector<16x128xf32>,
    return
  }
  func.func @transform_0(%arg0: i32) -> (i32, i32) {
    %c0_i32 = arith.constant 0 : i32
    %c0_i32_0 = arith.constant 0 : i32
    return %arg0, %c0_i32 : i32, i32
  }
  func.func @transform_1(%arg0: i32) -> (i32, i32) {
    %c0_i32 = arith.constant 0 : i32
    %c0_i32_0 = arith.constant 0 : i32
    %c0_i32_1 = arith.constant 0 : i32
    return %c0_i32, %c0_i32_0 : i32, i32
  }
  func.func @transform_2(%arg0: i32) -> (i32, i32) {
    %c0_i32 = arith.constant 0 : i32
    %c0_i32_0 = arith.constant 0 : i32
    %c0_i32_1 = arith.constant 0 : i32
    return %c0_i32, %c0_i32_0 : i32, i32
  }
  func.func @transform_3(%arg0: i32) -> (i32, i32) {
    %c0_i32 = arith.constant 0 : i32
    %c0_i32_0 = arith.constant 0 : i32
    return %arg0, %c0_i32 : i32, i32
  }
}

</mosaic_0001>

<bundles_post_ra>
// kernel: _feature_block_forward.1
= control target key start
LH: loop header
LB: loop body
LE: loop exit
PB: predicated region body
PF: predicated region fallthrough
CT: control target
= control target key end

     0   :  { %8 = vsyncpa [#allocation3], 0  ;;  %s233_s12 = smov [#allocation2]   ;;  %s282_s0 = inlined_call_operand.vmem [shape: bf16[16,128], index: 0, kind: input, shape index: {}]   ;;  %s283_s1 = inlined_call_operand.hbm [shape: bf16[128,128], index: 1, kind: input, shape index: {}]   ;;  %s284_s2 = inlined_call_operand.vmem [shape: f32[1,128], index: 2, kind: input, shape index: {}]   ;;  %s285_s3 = inlined_call_operand.vmem [shape: f32[16,128], index: 3, kind: output, shape index: {}]  }
   0x1   :  { %s16_s13 = sshll.u32 %s233_s12, 4  ;;  %s209_s16 = scalar_lea.hbm %s283_s1, 1024  ;;  %s17_s13 = int_to_ptr.vmem [resolvable:$true] %s16_s13 }
   0x2   :  { %p210_p0 = scmp.ne.s32.totalorder %s283_s1, %s209_s16  ;;  %p213_p1 = scmp.lt.u32.totalorder %s209_s16, %s283_s1 }
   0x4   :  { %p215_p2 = pnand %p213_p1, %p210_p0 }
   0x6   :  { %218 = shalt.err (!%p215_p2)
}
   0x7   :  { %s219_s21 = scalar_lea.vmem %s17_s13, 1024  ;;  %p224_p4 = scmp.lt.s32.totalorder %s17_s13, %s17_s13 }
   0x8   :  { %p220_p3 = scmp.ne.s32.totalorder %s17_s13, %s219_s21  ;;  %p225_p5 = scmp.lt.s32.totalorder %s219_s21, %s219_s21 }
   0xa   :  { %p226_p6 = por %p225_p5, %p224_p4 }
   0xc   :  { %p227_p7 = pnand %p226_p6, %p220_p3 }
   0xe   :  { %230 = shalt.err (!%p227_p7)
}
   0xf   :  { %s234_s22 = smov 64   ;;  %s235_s23 = smov 4  }
  0x10   :  { %22 = dma.hbm_to_vmem [thread:$0]  %s283_s1, 1024, %s17_s13, [#allocation3], %s234_s22, %s234_s22, %s235_s23  }
  0x11   :  { %231 = dma.done.wait [#allocation3], 1024  }
  0x12   :  { %232 = vsyncadd [#allocation3], 4294966272  ;;  %v236_v0 = vmov 0.0   ;;  %vm237_vm0 = vmmov 0   ;;  %v200_v1 = vld [vmem:[#allocation2] sm:$0xff]   ;;  %v201_v2 = vld [vmem:[#allocation2 + $0x8] sm:$0xff]  }
  0x13   :  { %175 = vmatprep.subr.bf16.mxu0 %v236_v0  ;;  %191 = vmatprep.mubr.msk.bf16.mxu0 %vm237_vm0, %v236_v0  ;;  %v202_v3 = vld [vmem:[#allocation2 + $0x10] sm:$0xff]   ;;  %v203_v4 = vld [vmem:[#allocation2 + $0x18] sm:$0xff]   ;;  %v204_v5 = vld [vmem:[#allocation2 + $0x20] sm:$0xff]  }
  0x14   :  { %176 = vmatpush3.bf16.msra.mxu0 %v200_v1  ;;  %v205_v6 = vld [vmem:[#allocation2 + $0x28] sm:$0xff]   ;;  %v206_v7 = vld [vmem:[#allocation2 + $0x30] sm:$0xff]   ;;  %v207_v8 = vld [vmem:[#allocation2 + $0x38] sm:$0xff]  }
  0x15   :  { %177 = vmatprep.subr.bf16.mxu0 %v236_v0  ;;  %v208_v9 = vld [vmem:[%s282_s0] sm:$0xff]  }
  0x16   :  { %v156_v10 = vld [vmem:[%s284_s2] ss:$0 sm:$0xff] }
  0x18   :  { %178 = vmatpush3.bf16.msra.mxu0 %v201_v2 }
  0x19   :  { %179 = vmatprep.subr.bf16.mxu0 %v236_v0 }
  0x1c   :  { %180 = vmatpush3.bf16.msra.mxu0 %v202_v3 }
  0x1d   :  { %181 = vmatprep.subr.bf16.mxu0 %v236_v0 }
  0x20   :  { %182 = vmatpush3.bf16.msra.mxu0 %v203_v4 }
  0x21   :  { %183 = vmatprep.subr.bf16.mxu0 %v236_v0 }
  0x24   :  { %184 = vmatpush3.bf16.msra.mxu0 %v204_v5 }
  0x25   :  { %185 = vmatprep.subr.bf16.mxu0 %v236_v0 }
  0x28   :  { %186 = vmatpush3.bf16.msra.mxu0 %v205_v6 }
  0x29   :  { %187 = vmatprep.subr.bf16.mxu0 %v236_v0 }
  0x2c   :  { %188 = vmatpush3.bf16.msra.mxu0 %v206_v7 }
  0x2d   :  { %189 = vmatprep.subr.bf16.mxu0 %v236_v0 }
  0x30   :  { %190 = vmatpush3.bf16.msra.mxu0 %v207_v8 }
  0x33   :  { %192 = vmatmul.mubr.bf16.vlgmr.msra.gmra.mrb[0].mxu0 %v208_v9 }
 0x106   :  { %v142_v11 = vpop.f32.mrb[0].mxu0 }
 0x107   :  { %v143_v12 = vadd.f32 %v156_v10, %v142_v11  ;;  %v193_v13 = vpop.f32.mrb[1].mxu0 }
 0x108   :  { %v145_v14 = vpop.f32.mrb[2].mxu0 }
 0x109   :  { %149 = vst [vmem:[%s285_s3] sm:$0xff] %v143_v12  ;;  %v146_v15 = vadd.f32 %v156_v10, %v145_v14  ;;  %v194_v16 = vpop.f32.mrb[3].mxu0 }
 0x10b   :  { %150 = vst [vmem:[%s285_s3 + $0x8] sm:$0xff] %v146_v15 }
 0x10c   :  { %155 = vsyncpa [#allocation3], 1 }

</bundles_post_ra>
